<compile_context>
chip_gen: v6e
topology: v6e:2x2x1
jax: 0.10.0
libtpu: 0.0.40
codegen_flags: <defaults>
</compile_context>

<pallas_src>
import functools

import jax
import jax.numpy as jnp
from jax import lax
from jax.experimental import pallas as pl
from jax.experimental.pallas import tpu as pltpu


# ----------------------------------------------------------------------------
# kernel bodies
# ----------------------------------------------------------------------------
def _per_sample_focal(logits_ref, targets_ref, gamma):
    """Per-sample focal term (no alpha) for one (C, TILE_N) tile -> (1, TILE_N) f32."""
    logits = logits_ref[...].astype(jnp.float32)          # (C, TILE_N), f32 math
    tgt = targets_ref[...]                                 # (1, TILE_N) int32
    c, tn = logits.shape

    # numerically-stable log-softmax pieces; reductions run over the (small)
    # sublane axis, all per-sample vectors are lane-dense (1, TILE_N).
    m = jnp.max(logits, axis=0, keepdims=True)                                  # (1, TILE_N)
    lse = m + jnp.log(jnp.sum(jnp.exp(logits - m), axis=0, keepdims=True))      # (1, TILE_N)

    # gather the target-class logit via a one-hot compare (no dynamic gather on TPU)
    classes = lax.broadcasted_iota(jnp.int32, (c, tn), 0)
    onehot = (classes == tgt).astype(jnp.float32)
    tgt_logit = jnp.sum(onehot * logits, axis=0, keepdims=True)                 # (1, TILE_N)

    ce = lse - tgt_logit
    pt = jnp.exp(-ce)
    one_minus_pt = jnp.maximum(1.0 - pt, 0.0)              # clamp fp32 jitter (ce can be -eps)

    if float(gamma) == float(int(gamma)) and int(gamma) >= 0:
        # integer gamma -> unrolled multiplies (VPU only, no transcendental)
        mod = jnp.ones_like(one_minus_pt)
        for _ in range(int(gamma)):
            mod = mod * one_minus_pt
    else:
        # fractional gamma: (1-pt)**gamma == exp(gamma*log(1-pt)); guard 1-pt == 0.
        safe = jnp.maximum(one_minus_pt, jnp.float32(1e-30))
        mod = jnp.where(one_minus_pt > 0.0,
                        jnp.exp(jnp.float32(gamma) * jnp.log(safe)),
                        jnp.zeros_like(one_minus_pt))
    return mod * ce                                         # (1, TILE_N)


def _valid_cols(tn, tile_n, n_valid):
    """Boolean (1, TILE_N) mask of in-range (non-padded) sample columns."""
    i = pl.program_id(0)
    col = lax.broadcasted_iota(jnp.int32, (1, tn), 1) + i * tile_n
    return col < n_valid


def _focal_sum_kernel(logits_ref, targets_ref, partial_ref, *, gamma, n_valid, tile_n):
    """One tile -> masked partial sum written into a disjoint (8,128) block at [0,0]."""
    focal = _per_sample_focal(logits_ref, targets_ref, gamma)        # (1, TILE_N)
    tn = focal.shape[1]
    masked = jnp.where(_valid_cols(tn, tile_n, n_valid), focal, 0.0)
    partial = jnp.sum(masked)

    r = lax.broadcasted_iota(jnp.int32, (8, 128), 0)
    c = lax.broadcasted_iota(jnp.int32, (8, 128), 1)
    partial_ref[...] = jnp.where((r == 0) & (c == 0), partial, 0.0)


def _focal_vec_kernel(logits_ref, targets_ref, out_ref, *, gamma, n_valid, tile_n):
    """One tile -> per-sample focal values (lane-dense (1, TILE_N) output block)."""
    focal = _per_sample_focal(logits_ref, targets_ref, gamma)        # (1, TILE_N)
    tn = focal.shape[1]
    out_ref[...] = jnp.where(_valid_cols(tn, tile_n, n_valid), focal, 0.0)


# ----------------------------------------------------------------------------
# wrapper
# ----------------------------------------------------------------------------
def focal_loss(logits, targets, *, alpha=1.0, gamma=2.0, reduction="mean"):
    """logits: (N, C) float (f32/bf16), targets: (N,) int.

    reduction='mean'/'sum' -> scalar; anything else -> per-sample (N,) vector
    (matches the PyTorch module's fall-through behaviour).
    """
    n, c = logits.shape
    dtype_bytes = jnp.dtype(logits.dtype).itemsize

    # Tile sizing: samples live on the lane axis, so TILE_N is a multiple of 128.
    # Budget ~4 MiB per logits buffer (x2 double-buffered) using the *padded*
    # VMEM footprint (sublane packing: f32->8, bf16->16, int8->32 rows).
    pack = {4: 8, 2: 16, 1: 32}.get(dtype_bytes, 8)
    c_sublanes = pl.cdiv(c, pack) * pack
    budget_bytes = 4 * 1024 * 1024
    tile_n = (budget_bytes // max(1, c_sublanes * dtype_bytes)) // 128 * 128
    tile_n = max(128, min(4096, tile_n))
    tile_n = min(tile_n, pl.cdiv(n, 128) * 128)            # never bigger than padded N

    num_tiles = pl.cdiv(n, tile_n)
    n_pad = num_tiles * tile_n

    # Classes on sublanes, samples on lanes.  The transpose/pad is a thin XLA
    # streaming pass; everything downstream is lane-dense.
    logits_t = jnp.transpose(logits)                        # (C, N), native dtype
    targets_row = targets.astype(jnp.int32).reshape(1, n)   # (1, N)
    if n_pad != n:
        logits_t = jnp.pad(logits_t, ((0, 0), (0, n_pad - n)))
        targets_row = jnp.pad(targets_row, ((0, 0), (0, n_pad - n)))

    in_specs = [
        pl.BlockSpec((c, tile_n), lambda i: (0, i)),        # logits tile (native dtype)
        pl.BlockSpec((1, tile_n), lambda i: (0, i)),        # targets tile
    ]
    cparams = pltpu.CompilerParams(
        dimension_semantics=("parallel",),                  # tiles independent -> 2 TCs on v7x
        vmem_limit_bytes=32 * 1024 * 1024,
    )
    cost = pl.CostEstimate(
        flops=int(8 * n_pad * c + 24 * n_pad),
        transcendentals=int(n_pad * c + 3 * n_pad),
        bytes_accessed=int(n_pad * c * dtype_bytes + n_pad * 4
                           + max(n_pad, num_tiles * 8 * 128) * 4),
    )

    if reduction in ("mean", "sum"):
        kernel = functools.partial(_focal_sum_kernel, gamma=gamma, n_valid=n, tile_n=tile_n)
        partials = pl.pallas_call(
            kernel,
            out_shape=jax.ShapeDtypeStruct((num_tiles * 8, 128), jnp.float32),
            grid=(num_tiles,),
            in_specs=in_specs,
            out_specs=pl.BlockSpec((8, 128), lambda i: (i, 0)),  # disjoint per-tile partials
            compiler_params=cparams,
            cost_estimate=cost,
        )(logits_t, targets_row)
        total = jnp.float32(alpha) * jnp.sum(partials)
        if reduction == "mean":
            return total / jnp.float32(n)
        return total

    # PyTorch fall-through ('none' or anything else): per-sample focal vector.
    kernel = functools.partial(_focal_vec_kernel, gamma=gamma, n_valid=n, tile_n=tile_n)
    vec = pl.pallas_call(
        kernel,
        out_shape=jax.ShapeDtypeStruct((1, n_pad), jnp.float32),
        grid=(num_tiles,),
        in_specs=in_specs,
        out_specs=pl.BlockSpec((1, tile_n), lambda i: (0, i)),   # lane-dense output slab
        compiler_params=cparams,
        cost_estimate=cost,
    )(logits_t, targets_row)
    return jnp.float32(alpha) * vec[0, :n]


# ----------------------------------------------------------------------------
# pure-JAX reference
# ----------------------------------------------------------------------------
def _focal_loss_ref(logits, targets, alpha=1.0, gamma=2.0, reduction="mean"):
    logits = logits.astype(jnp.float32)
    lse = jax.nn.logsumexp(logits, axis=-1)
    tgt_logit = jnp.take_along_axis(
        logits, targets[:, None].astype(jnp.int32), axis=-1
    )[:, 0]
    ce = lse - tgt_logit
    pt = jnp.exp(-ce)
    focal = alpha * (1.0 - pt) ** gamma * ce
    if reduction == "mean":
        return jnp.mean(focal)
    if reduction == "sum":
        return jnp.sum(focal)
    return focal


if __name__ == "__main__":
    key = jax.random.PRNGKey(0)
    k1, k2, k3, k4 = jax.random.split(key, 4)

    # Case 1: small (batch, num_classes) logits, f32, mean + sum reductions.
    N1, C1 = 8, 16
    logits1 = jax.random.normal(k1, (N1, C1), dtype=jnp.float32) * 2.0
    targets1 = jax.random.randint(k2, (N1,), 0, C1, dtype=jnp.int32)
    loss1 = focal_loss(logits1, targets1, alpha=1.0, gamma=2.0, reduction="mean")
    jax.block_until_ready(loss1)
    ref1 = _focal_loss_ref(logits1, targets1, alpha=1.0, gamma=2.0, reduction="mean")
    assert jnp.allclose(loss1, ref1, rtol=1e-5, atol=1e-5), (loss1, ref1)

    loss1s = focal_loss(logits1, targets1, alpha=1.0, gamma=2.0, reduction="sum")
    jax.block_until_ready(loss1s)
    ref1s = _focal_loss_ref(logits1, targets1, alpha=1.0, gamma=2.0, reduction="sum")
    assert jnp.allclose(loss1s, ref1s, rtol=1e-5, atol=1e-5), (loss1s, ref1s)

    # Case 2: ragged N (exercises padded-column masking), bf16 logits (native-dtype DMA).
    N2, C2 = 13, 4
    logits2 = (jax.random.normal(k3, (N2, C2), dtype=jnp.float32) * 3.0).astype(jnp.bfloat16)
    targets2 = jax.random.randint(k4, (N2,), 0, C2, dtype=jnp.int32)
    loss2 = focal_loss(logits2, targets2, alpha=0.75, gamma=2.0, reduction="mean")
    jax.block_until_ready(loss2)
    ref2 = _focal_loss_ref(logits2, targets2, alpha=0.75, gamma=2.0, reduction="mean")
    assert jnp.allclose(loss2, ref2, rtol=1e-4, atol=1e-4), (loss2, ref2)

    # Case 3: reduction='none' -> per-sample focal vector (ragged N, f32).
    logits3 = logits2.astype(jnp.float32)
    vec3 = focal_loss(logits3, targets2, alpha=0.5, gamma=2.0, reduction="none")
    jax.block_until_ready(vec3)
    ref3 = _focal_loss_ref(logits3, targets2, alpha=0.5, gamma=2.0, reduction="none")
    assert vec3.shape == (N2,)
    assert jnp.allclose(vec3, ref3, rtol=1e-5, atol=1e-5), (vec3, ref3)

    print("KERNEL_OK")
</pallas_src>

<mosaic_0001>
module attributes {stable_mosaic.version = 11 : i64} {
  func.func @_focal_sum_kernel(%arg0: i32, %arg1: memref<16x128xf32, #tpu.memory_space<vmem>>, %arg2: memref<1x128xi32, #tpu.memory_space<vmem>>, %arg3: memref<8x128xf32, #tpu.memory_space<vmem>>) attributes {dimension_semantics = [#tpu.dimension_semantics<parallel>], iteration_bounds = array<i64: 1>, scalar_prefetch = 0 : i64, scratch_operands = 0 : i64, tpu.core_type = #tpu.core_type<tc>, window_params = [{transform_indices = @transform_0, window_bounds = array<i64: 16, 128>}, {transform_indices = @transform_1, window_bounds = array<i64: 1, 128>}, {transform_indices = @transform_2, window_bounds = array<i64: 8, 128>}]} {
    %c0 = arith.constant 0 : index
    %c0_0 = arith.constant 0 : index
    %0 = vector.load %arg1[%c0, %c0_0] : memref<16x128xf32, #tpu.memory_space<vmem>>, vector<16x128xf32>
    %c0_1 = arith.constant 0 : index
    %c0_2 = arith.constant 0 : index
    %1 = vector.load %arg2[%c0_1, %c0_2] : memref<1x128xi32, #tpu.memory_space<vmem>>, vector<1x128xi32>
    %cst = arith.constant dense<0xFF800000> : vector<128xf32>
    %2 = vector.multi_reduction <maximumf>, %0, %cst [0] : vector<16x128xf32> to vector<128xf32>
    %3 = vector.shape_cast %2 : vector<128xf32> to vector<1x128xf32>
    %4 = vector.broadcast %3 : vector<1x128xf32> to vector<16x128xf32>
    %5 = arith.subf %0, %4 : vector<16x128xf32>
    %6 = math.exp %5 : vector<16x128xf32>
    %cst_3 = arith.constant dense<0.000000e+00> : vector<128xf32>
    %7 = vector.multi_reduction <add>, %6, %cst_3 [0] : vector<16x128xf32> to vector<128xf32>
    %8 = vector.shape_cast %7 : vector<128xf32> to vector<1x128xf32>
    %9 = math.log %8 : vector<1x128xf32>
    %10 = arith.addf %3, %9 : vector<1x128xf32>
    %11 = tpu.iota {dimensions = array<i32: 0>} : vector<16x128xi32>
    %12 = vector.broadcast %1 : vector<1x128xi32> to vector<16x128xi32>
    %13 = arith.cmpi eq, %11, %12 : vector<16x128xi32>
    %14 = arith.extui %13 : vector<16x128xi1> to vector<16x128xi32>
    %15 = arith.sitofp %14 : vector<16x128xi32> to vector<16x128xf32>
    %16 = arith.mulf %15, %0 : vector<16x128xf32>
    %cst_4 = arith.constant dense<0.000000e+00> : vector<128xf32>
    %17 = vector.multi_reduction <add>, %16, %cst_4 [0] : vector<16x128xf32> to vector<128xf32>
    %18 = vector.shape_cast %17 : vector<128xf32> to vector<1x128xf32>
    %19 = arith.subf %10, %18 : vector<1x128xf32>
    %cst_5 = arith.constant 0.000000e+00 : f32
    %20 = vector.broadcast %cst_5 : f32 to vector<1x128xf32>
    %21 = arith.subf %20, %19 : vector<1x128xf32>
    %22 = math.exp %21 : vector<1x128xf32>
    %cst_6 = arith.constant 1.000000e+00 : f32
    %23 = vector.broadcast %cst_6 : f32 to vector<1x128xf32>
    %24 = arith.subf %23, %22 : vector<1x128xf32>
    %cst_7 = arith.constant 0.000000e+00 : f32
    %25 = vector.broadcast %cst_7 : f32 to vector<1x128xf32>
    %26 = arith.maximumf %24, %25 : vector<1x128xf32>
    %cst_8 = arith.constant 1.000000e+00 : f32
    %27 = vector.broadcast %cst_8 : f32 to vector<1x128xf32>
    %28 = arith.mulf %27, %26 : vector<1x128xf32>
    %29 = arith.mulf %28, %26 : vector<1x128xf32>
    %30 = arith.mulf %29, %19 : vector<1x128xf32>
    %31 = tpu.iota {dimensions = array<i32: 1>} : vector<1x128xi32>
    %c128_i32 = arith.constant 128 : i32
    %32 = arith.muli %arg0, %c128_i32 : i32
    %33 = vector.broadcast %32 : i32 to vector<1x128xi32>
    %34 = arith.addi %31, %33 : vector<1x128xi32>
    %c8_i32 = arith.constant 8 : i32
    %35 = vector.broadcast %c8_i32 : i32 to vector<1x128xi32>
    %36 = arith.cmpi slt, %34, %35 : vector<1x128xi32>
    %cst_9 = arith.constant 0.000000e+00 : f32
    %37 = vector.broadcast %cst_9 : f32 to vector<1x128xf32>
    %38 = arith.select %36, %30, %37 : vector<1x128xi1>, vector<1x128xf32>
    %39 = vector.shape_cast %38 : vector<1x128xf32> to vector<1x1x128xf32>
    %cst_10 = arith.constant dense<0.000000e+00> : vector<1xf32>
    %40 = vector.multi_reduction <add>, %39, %cst_10 [1, 2] : vector<1x1x128xf32> to vector<1xf32>
    %41 = vector.shape_cast %40 : vector<1xf32> to vector<1x1x1xf32>
    %42 = vector.extract %41[0, 0, 0] : f32 from vector<1x1x1xf32>
    %43 = tpu.iota {dimensions = array<i32: 0>} : vector<8x128xi32>
    %44 = tpu.iota {dimensions = array<i32: 1>} : vector<8x128xi32>
    %c0_i32 = arith.constant 0 : i32
    %45 = vector.broadcast %c0_i32 : i32 to vector<8x128xi32>
    %46 = arith.cmpi eq, %43, %45 : vector<8x128xi32>
    %c0_i32_11 = arith.constant 0 : i32
    %47 = vector.broadcast %c0_i32_11 : i32 to vector<8x128xi32>
    %48 = arith.cmpi eq, %44, %47 : vector<8x128xi32>
    %49 = arith.andi %46, %48 : vector<8x128xi1>
    %cst_12 = arith.constant 0.000000e+00 : f32
    %50 = vector.broadcast %42 : f32 to vector<8x128xf32>
    %51 = vector.broadcast %cst_12 : f32 to vector<8x128xf32>
    %52 = arith.select %49, %50, %51 : vector<8x128xi1>, vector<8x128xf32>
    %c0_13 = arith.constant 0 : index
    %c0_14 = arith.constant 0 : index
    %53 = vector.load %arg3[%c0_13, %c0_14] : memref<8x128xf32, #tpu.memory_space<vmem>>, vector<8x128xf32>
    tpu.vector_store %arg3[%c0_13, %c0_14], %52 {strides = array<i32>} : memref<8x128xf32, #tpu.memory_space<vmem>>, vector<8x128xf32>,
    return
  }
  func.func @transform_0(%arg0: i32) -> (i32, i32) {
    %c0_i32 = arith.constant 0 : i32
    %c0_i32_0 = arith.constant 0 : i32
    return %c0_i32, %arg0 : i32, i32
  }
  func.func @transform_1(%arg0: i32) -> (i32, i32) {
    %c0_i32 = arith.constant 0 : i32
    %c0_i32_0 = arith.constant 0 : i32
    return %c0_i32, %arg0 : i32, i32
  }
  func.func @transform_2(%arg0: i32) -> (i32, i32) {
    %c0_i32 = arith.constant 0 : i32
    %c0_i32_0 = arith.constant 0 : i32
    return %arg0, %c0_i32 : i32, i32
  }
}

</mosaic_0001>

<bundles_post_ra>
// kernel: tpu_custom_call.1
= control target key start
LH: loop header
LB: loop body
LE: loop exit
PB: predicated region body
PF: predicated region fallthrough
CT: control target
= control target key end

     0   :  { %7 = vsyncpa [#allocation3], 0  ;;  %s212_s0 = inlined_call_operand.hbm [shape: f32[16,128], index: 0, kind: input, shape index: {}]   ;;  %s213_s1 = inlined_call_operand.vmem [shape: s32[1,128], index: 1, kind: input, shape index: {}]   ;;  %s214_s2 = inlined_call_operand.hbm [shape: f32[8,128], index: 2, kind: output, shape index: {}]  }
   0x1   :  { %8 = vsyncpa [#allocation4], 0  ;;  %s183_s9 = smov [#allocation2]  }
   0x2   :  { %s14_s10 = sshll.u32 %s183_s9, 4  ;;  %s15_s10 = int_to_ptr.vmem [resolvable:$true] %s14_s10 }
   0x3   :  { %s147_s11 = scalar_lea.vmem %s15_s10, 256  ;;  %p152_p1 = scmp.lt.s32.totalorder %s15_s10, %s15_s10 }
   0x4   :  { %p148_p0 = scmp.ne.s32.totalorder %s15_s10, %s147_s11  ;;  %p153_p2 = scmp.lt.s32.totalorder %s147_s11, %s147_s11 }
   0x6   :  { %p154_p3 = por %p153_p2, %p152_p1 }
   0x8   :  { %p155_p4 = pnand %p154_p3, %p148_p0 }
   0xa   :  { %158 = shalt.err (!%p155_p4)
}
   0xb   :  { %s184_s12 = smov 128   ;;  %s185_s13 = smov 8  }
   0xc   :  { %20 = dma.hbm_to_vmem [thread:$0]  %s212_s0, 256, %s15_s10, [#allocation3], %s184_s12, %s184_s12, %s185_s13  }
   0xd   :  { %179 = dma.done.wait [#allocation3], 256  }
   0xe   :  { %180 = vsyncadd [#allocation3], 4294967040  ;;  %v26_v0 = vld [vmem:[#allocation2] sm:$0xff]  ;;  %v27_v1 = vld [vmem:[#allocation2 + $0x8] sm:$0xff]  ;;  %v52_v11 = vlaneseq  ;;  %v186_v17 = vmov 0.0   ;;  %vm89_vm3 = vcmask 1040384  }
   0xf   :  { %v29_v2 = vmax.f32 %v26_v0, %v27_v1  ;;  %v121_v16 = vld [vmem:[%s213_s1] ss:$0 sm:$0xff]  ;;  %s187_s1 = smov [#allocation5]  }
  0x10   :  { %v53_v14 = vshrl.u32 %v52_v11, 7  ;;  %v83_v46 = vand.u32 127, %v52_v11  ;;  %s112_s17 = sshll.u32 %s187_s1, 4  ;;  %s113_s17 = int_to_ptr.vmem [resolvable:$true] %s112_s17 }
  0x11   :  { %v30_v3 = vrot.slane %v29_v2, 4  ;;  %s159_s19 = scalar_lea.vmem %s113_s17, 128  ;;  %p164_p6 = scmp.lt.s32.totalorder %s113_s17, %s113_s17 }
  0x12   :  { %v54_v15 = vadd.s32 8, %v53_v14  ;;  %vm59_vm0 = vcmp.eq.s32.totalorder %v53_v14, %v121_v16  ;;  %vm87_vm2 = vcmp.lt.s32.totalorder %v83_v46, 8  ;;  %vm100_vm4 = vcmp.eq.s32.totalorder %v53_v14, 0  ;;  %p160_p5 = scmp.ne.s32.totalorder %s113_s17, %s159_s19  ;;  %p165_p7 = scmp.lt.s32.totalorder %s159_s19, %s159_s19 }
  0x13   :  { %v31_v4 = vmax.f32 %v29_v2, %v30_v3  ;;  %v122_v18 = vsel %vm59_vm0, 1.0, %v186_v17  ;;  %vm101_vm5 = vcmp.eq.s32.totalorder %v83_v46, 0 }
  0x14   :  { %vm60_vm1 = vcmp.eq.s32.totalorder %v54_v15, %v121_v16  ;;  %v65_v23 = vmul.f32 %v122_v18, %v26_v0  ;;  %vm102_vm6 = vmand %vm100_vm4, %vm101_vm5  ;;  %p166_p8 = por %p165_p7, %p164_p6 }
  0x15   :  { %v32_v5 = vrot.slane %v31_v4, 2  ;;  %v123_v19 = vsel %vm60_vm1, 1.0, %v186_v17 }
  0x16   :  { %v66_v24 = vmul.f32 %v123_v19, %v27_v1  ;;  %p167_p9 = pnand %p166_p8, %p160_p5 }
  0x17   :  { %v33_v6 = vmax.f32 %v31_v4, %v32_v5 }
  0x18   :  { %v67_v27 = vadd.f32 %v66_v24, %v65_v23 }
  0x19   :  { %v34_v7 = vrot.slane %v33_v6, 1 }
  0x1a   :  { %v68_v30 = vrot.slane %v67_v27, 4 }
  0x1b   :  { %v35_v8 = vmax.f32 %v33_v6, %v34_v7 }
  0x1c   :  { %v69_v33 = vadd.f32 %v68_v30, %v67_v27 }
  0x1d   :  { %v36_v9 = vsub.f32 %v26_v0, %v35_v8  ;;  %v37_v10 = vsub.f32 %v27_v1, %v35_v8 }
  0x1e   :  { %v70_v34 = vrot.slane %v69_v33, 2 }
  0x1f   :  { %v38_v12 = vmul.f32 1.442695, %v36_v9  ;;  %v40_v13 = vmul.f32 1.442695, %v37_v10 }
  0x20   :  { %v71_v35 = vadd.f32 %v70_v34, %v69_v33 }
  0x21   :  { %131 = vpow2.f32 %v38_v12 }
  0x22   :  { %133 = vpow2.f32 %v40_v13  ;;  %v72_v36 = vrot.slane %v71_v35, 1 }
  0x24   :  { %v73_v39 = vadd.f32 %v72_v36, %v71_v35 }
  0x2e   :  { %v132_v20 = vpop.eup %131 }
  0x2f   :  { %v134_v21 = vpop.eup %133 }
  0x30   :  { %v42_v22 = vadd.f32 %v134_v21, %v132_v20 }
  0x32   :  { %v43_v25 = vrot.slane %v42_v22, 4 }
  0x34   :  { %v44_v26 = vadd.f32 %v43_v25, %v42_v22 }
  0x36   :  { %v45_v28 = vrot.slane %v44_v26, 2 }
  0x38   :  { %v46_v29 = vadd.f32 %v45_v28, %v44_v26 }
  0x3a   :  { %v47_v31 = vrot.slane %v46_v29, 1 }
  0x3c   :  { %v48_v32 = vadd.f32 %v47_v31, %v46_v29 }
  0x3e   :  { %135 = vlog2.f32 %v48_v32 }
  0x4b   :  { %v136_v37 = vpop.eup %135 }
  0x4c   :  { %v50_v38 = vmul.f32 0.6931472, %v136_v37 }
  0x4e   :  { %v51_v40 = vadd.f32 %v50_v38, %v35_v8 }
  0x50   :  { %v74_v41 = vsub.f32 %v51_v40, %v73_v39 }
  0x52   :  { %v75_v42 = vsub.f32 0.0, %v74_v41 }
  0x54   :  { %v76_v43 = vmul.f32 1.442695, %v75_v42 }
  0x56   :  { %137 = vpow2.f32 %v76_v43 }
  0x63   :  { %v138_v44 = vpop.eup %137 }
  0x64   :  { %v78_v45 = vsub.f32 1.0, %v138_v44 }
  0x66   :  { %v79_v47 = vmax.f32 %v78_v45, 0.0 }
  0x68   :  { %v80_v48 = vmul.f32 %v79_v47, %v79_v47 }
  0x6a   :  { %v81_v49 = vmul.f32 %v80_v48, %v74_v41 }
  0x6c   :  { %v88_v50 = vsel %vm87_vm2, %v81_v49, 0.0 }
  0x6d   :  { %v90_v51 = vsel %vm89_vm3, %v88_v50, 0.0 }
  0x6e   :  { %91 = vadd.xlane.f32.xlu0 %v90_v51 }
  0xf7   :  { %v92_v52 = vpop.xlane.xlu0 %91 }
  0xf8   :  { %v93_v53 = vrot.slane %v92_v52, 4 }
  0xfa   :  { %v94_v54 = vadd.f32 %v93_v53, %v92_v52 }
  0xfc   :  { %v95_v55 = vrot.slane %v94_v54, 2 }
  0xfe   :  { %v96_v56 = vadd.f32 %v95_v55, %v94_v54 }
 0x100   :  { %v97_v57 = vrot.slane %v96_v56, 1 }
 0x102   :  { %v98_v58 = vadd.f32 %v97_v57, %v96_v56 }
 0x104   :  { %124 = vpush %v98_v58 }
 0x135   :  { %s125_s18 = spop %124 }
 0x136   :  { %v103_v59 = vstv %s125_s18 }
 0x137   :  { %v104_v60 = vsel %vm102_vm6, %v103_v59, 0.0 }
 0x138   :  { %105 = vst [vmem:[#allocation5] sm:$0xff] %v104_v60 }
 0x139   :  { %170 = shalt.err (!%p167_p9)
}
 0x13a   :  { %115 = dma.vmem_to_hbm [thread:$0]  %s113_s17, 128, %s214_s2, [#allocation4]  }
 0x13b   :  { %181 = dma.done.wait [#allocation4], 128  }
 0x13c   :  { %182 = vsyncadd [#allocation4], 4294967168 }
 0x13d   :  { %119 = vsyncpa [#allocation3], 1 }
 0x13e   :  { %120 = vsyncpa [#allocation4], 1 }

</bundles_post_ra>
